<compile_context>
chip_gen: v7x
topology: tpu7x:2x2x1
jax: 0.10.0
libtpu: 0.0.40
codegen_flags: <defaults>
</compile_context>

<pallas_src>
import jax
import jax.numpy as jnp
import numpy as np
from jax.experimental import pallas as pl
from jax.experimental.pallas import tpu as pltpu


def edge_network_kernel(bond_ref, atom_ref, nbr_ref, dst_ref, w_ref, bsum_ref,
                        out_ref):
    bond_t = bond_ref[...]          # (Db+1, Ep)   f32  (ones row appended, transposed)
    atom_t = atom_ref[...]          # (D*D, Np)    f32  (atoms^T, sublane-tiled D times)
    nbr = nbr_ref[...]              # (1, Ep)      int32 tile-local neighbor indices
    dst = dst_ref[...]              # (Ep, 1)      int32 tile-local destination indices
    w_t = w_ref[...]                # (D*D, Db+1)  f32  (PyTorch W with bias column)
    bsum = bsum_ref[...]            # (D, D*D)     f32  constant block-sum matrix

    dd, np_ = atom_t.shape
    ep = bond_t.shape[1]
    d = bsum.shape[0]

    # nn.Linear with bias folded: (D*D, Db+1) @ (Db+1, Ep) -> (D*D, Ep).
    proj_t = jnp.dot(w_t, bond_t, preferred_element_type=jnp.float32)

    # Fused neighbor gather + per-edge lane tiling (one MXU push):
    #   nbr_tiled_t[i*D+j, e] = atom[nbr[e], j]
    onehot_nbr_t = (jax.lax.broadcasted_iota(jnp.int32, (np_, ep), 0)
                    == nbr).astype(jnp.float32)                       # (Np, Ep)
    nbr_tiled_t = jnp.dot(atom_t, onehot_nbr_t,
                          preferred_element_type=jnp.float32)         # (D*D, Ep)

    # Per-edge mat-vec via the hoisted block-sum matrix:
    #   transformed_t[i, e] = sum_j proj[e, i*D+j] * atom[nbr[e], j]
    transformed_t = jnp.dot(bsum, proj_t * nbr_tiled_t,
                            preferred_element_type=jnp.float32)       # (D, Ep)

    # index_add_ scatter as a one-hot matmul; output is lane-dense (D, Np).
    onehot_dst = (jax.lax.broadcasted_iota(jnp.int32, (ep, np_), 1)
                  == dst).astype(jnp.float32)                         # (Ep, Np)
    out_ref[...] = jnp.dot(transformed_t, onehot_dst,
                           preferred_element_type=jnp.float32)        # (D, Np)


def _cost_estimate(num_tiles, d, np_, ep, db_aug):
    dd = d * d
    flops = num_tiles * (2 * dd * db_aug * ep     # projection
                         + 2 * dd * np_ * ep      # fused one-hot gather
                         + dd * ep                # elementwise product
                         + 2 * d * dd * ep        # block-sum mat-vec
                         + 2 * d * ep * np_)      # one-hot scatter
    bytes_accessed = 4 * (num_tiles * (db_aug * ep + dd * np_ + 2 * ep + d * np_)
                          + dd * db_aug + d * dd)
    return pl.CostEstimate(flops=int(flops), transcendentals=0,
                           bytes_accessed=int(bytes_accessed))


def edge_network_batched(atom_features, bond_features, pair_indices,
                         weight, bias, *, b_tile=8):
    """Batched EdgeNetwork forward.

    atom_features: (B, N, D), bond_features: (B, E, Db), pair_indices: (B, E, 2)
    weight: (D*D, Db)  (PyTorch nn.Linear layout), bias: (D*D,)
    Returns (B, N, D).
    """
    B, N, D = atom_features.shape
    _, E, Db = bond_features.shape

    b_tile = max(1, min(b_tile, B))
    num_tiles = pl.cdiv(B, b_tile)
    Bp = num_tiles * b_tile

    af = atom_features.astype(jnp.float32)
    bf = bond_features.astype(jnp.float32)
    pi = pair_indices.astype(jnp.int32)
    if Bp != B:  # pad batch with empty graphs (all-zero atoms/bonds -> zero output)
        af = jnp.concatenate([af, jnp.zeros((Bp - B, N, D), jnp.float32)], 0)
        bf = jnp.concatenate([bf, jnp.zeros((Bp - B, E, Db), jnp.float32)], 0)
        pi = jnp.concatenate([pi, jnp.zeros((Bp - B, E, 2), jnp.int32)], 0)

    Np = b_tile * N   # tile-local atom count (lane dim of the output)
    Ep = b_tile * E   # tile-local edge count (lane dim of the intermediates)

    # nn.Linear params: (D*D, Db) weight + bias column -> (D*D, Db+1).
    w_aug_t = jnp.concatenate(
        [weight.astype(jnp.float32), bias.astype(jnp.float32)[:, None]], axis=1)

    # Constant block-sum matrix (hoisted out of the kernel): bsum[i, i*D+j] = 1.
    bsum = (jnp.arange(D * D)[None, :] // D
            == jnp.arange(D)[:, None]).astype(jnp.float32)            # (D, D*D)

    # Bonds: append ones column, flatten per tile, transpose -> (T, Db+1, Ep).
    bond_aug = jnp.concatenate([bf, jnp.ones((Bp, E, 1), jnp.float32)], axis=-1)
    bond_t = bond_aug.reshape(num_tiles, Ep, Db + 1).transpose(0, 2, 1)

    # Atoms: flatten per tile, transpose, sublane-tile D times -> (T, D*D, Np),
    # atom_tiled_t[t, i*D+j, n_local] = atoms[n_local-th atom of tile t, j].
    atom_t = af.reshape(num_tiles, Np, D).transpose(0, 2, 1)           # (T, D, Np)
    atom_tiled_t = jnp.tile(atom_t, (1, D, 1))                         # (T, D*D, Np)

    # Pair indices offset into the tile-local atom range [0, b_tile*N).
    # (Out-of-range indices would yield an all-zero one-hot row == dropped edge.)
    local_off = (jnp.arange(Bp, dtype=jnp.int32) % b_tile) * N
    dst = (pi[..., 0] + local_off[:, None]).reshape(num_tiles, Ep)[:, :, None]
    nbr = (pi[..., 1] + local_off[:, None]).reshape(num_tiles, Ep)[:, None, :]

    out_t = pl.pallas_call(
        edge_network_kernel,
        out_shape=jax.ShapeDtypeStruct((num_tiles, D, Np), jnp.float32),
        grid=(num_tiles,),
        in_specs=[
            pl.BlockSpec((None, Db + 1, Ep), lambda t: (t, 0, 0)),   # bonds^T (+ones)
            pl.BlockSpec((None, D * D, Np), lambda t: (t, 0, 0)),    # atoms^T tiled
            pl.BlockSpec((None, 1, Ep), lambda t: (t, 0, 0)),        # neighbor indices
            pl.BlockSpec((None, Ep, 1), lambda t: (t, 0, 0)),        # destination indices
            pl.BlockSpec((D * D, Db + 1), lambda t: (0, 0)),         # shared weight (resident)
            pl.BlockSpec((D, D * D), lambda t: (0, 0)),              # block-sum const (resident)
        ],
        out_specs=pl.BlockSpec((None, D, Np), lambda t: (t, 0, 0)),
        compiler_params=pltpu.CompilerParams(
            dimension_semantics=("parallel",),
            # Tiny blocks here; raise this when tiles grow (keep 2x-buffered
            # inputs under v7x's 64 MiB physical VMEM).
            vmem_limit_bytes=32 * 1024 * 1024),
        cost_estimate=_cost_estimate(num_tiles, D, Np, Ep, Db + 1),
    )(bond_t, atom_tiled_t, nbr, dst, w_aug_t, bsum)

    # (T, D, Np) -> (Bp, N, D) -> drop batch padding.
    out = out_t.transpose(0, 2, 1).reshape(Bp, N, D)
    return out[:B]


def edge_network(atom_features, bond_features, pair_indices, weight, bias):
    """Single-graph forward (matches the PyTorch module); routed through the
    batched/tiled path to share the kernel."""
    out = edge_network_batched(atom_features[None], bond_features[None],
                               pair_indices[None], weight, bias, b_tile=1)
    return out[0]


def edge_network_ref(atom_features, bond_features, pair_indices, weight, bias):
    """Pure-JAX reference of the intended EdgeNetwork forward."""
    num_atoms, atom_dim = atom_features.shape
    proj = bond_features @ weight.T + bias                      # (E, D*D)
    proj = proj.reshape(-1, atom_dim, atom_dim)                 # (E, D, D)
    nbrs = atom_features[pair_indices[:, 1]]                    # (E, D)
    transformed = jnp.einsum("eij,ej->ei", proj, nbrs)          # (E, D)
    agg = jnp.zeros_like(atom_features)
    agg = agg.at[pair_indices[:, 0]].add(transformed)
    return agg


if __name__ == "__main__":
    key = jax.random.PRNGKey(0)
    k_atom, k_bond, k_pair, k_w, k_b, k_ab, k_bb, k_pb = jax.random.split(key, 8)

    num_atoms, atom_dim = 16, 8
    num_bonds, bond_dim = 24, 4

    atom_features = jax.random.normal(k_atom, (num_atoms, atom_dim), jnp.float32)
    bond_features = jax.random.normal(k_bond, (num_bonds, bond_dim), jnp.float32)
    pair_indices = jax.random.randint(
        k_pair, (num_bonds, 2), 0, num_atoms, dtype=jnp.int32)

    # Deterministic nn.Linear(bond_dim, atom_dim*atom_dim) parameters (PyTorch layout).
    weight = jax.random.normal(k_w, (atom_dim * atom_dim, bond_dim), jnp.float32) * 0.1
    bias = jax.random.normal(k_b, (atom_dim * atom_dim,), jnp.float32) * 0.1

    # --- single graph (routed through the batched path) ---
    out = edge_network(atom_features, bond_features, pair_indices, weight, bias)
    out = jax.block_until_ready(out)
    ref = edge_network_ref(atom_features, bond_features, pair_indices, weight, bias)
    np.testing.assert_allclose(np.asarray(out), np.asarray(ref), rtol=1e-5, atol=1e-5)

    # --- batched: B=16 graphs, B_TILE=8 -> 2 grid steps ("parallel" axis, lane-dense out) ---
    B = 16
    atoms_b = jax.random.normal(k_ab, (B, num_atoms, atom_dim), jnp.float32)
    bonds_b = jax.random.normal(k_bb, (B, num_bonds, bond_dim), jnp.float32)
    pairs_b = jax.random.randint(
        k_pb, (B, num_bonds, 2), 0, num_atoms, dtype=jnp.int32)

    out_b = edge_network_batched(atoms_b, bonds_b, pairs_b, weight, bias, b_tile=8)
    out_b = jax.block_until_ready(out_b)
    ref_b = jax.vmap(
        lambda a, bo, p: edge_network_ref(a, bo, p, weight, bias))(atoms_b, bonds_b, pairs_b)
    np.testing.assert_allclose(np.asarray(out_b), np.asarray(ref_b), rtol=1e-5, atol=1e-5)

    print("KERNEL_OK")
</pallas_src>

<mosaic_0001>
module attributes {stable_mosaic.version = 11 : i64} {
  func.func @edge_network_kernel(%arg0: i32, %arg1: memref<1x5x24xf32, #tpu.memory_space<vmem>>, %arg2: memref<1x64x16xf32, #tpu.memory_space<vmem>>, %arg3: memref<1x1x24xi32, #tpu.memory_space<vmem>>, %arg4: memref<1x24x1xi32, #tpu.memory_space<vmem>>, %arg5: memref<64x5xf32, #tpu.memory_space<vmem>>, %arg6: memref<8x64xf32, #tpu.memory_space<vmem>>, %arg7: memref<1x8x16xf32, #tpu.memory_space<vmem>>) attributes {dimension_semantics = [#tpu.dimension_semantics<parallel>], iteration_bounds = array<i64: 1>, scalar_prefetch = 0 : i64, scratch_operands = 0 : i64, tpu.core_type = #tpu.core_type<tc>, window_params = [{transform_indices = @transform_0, window_bounds = array<i64: 1, 5, 24>}, {transform_indices = @transform_1, window_bounds = array<i64: 1, 64, 16>}, {transform_indices = @transform_2, window_bounds = array<i64: 1, 1, 24>}, {transform_indices = @transform_3, window_bounds = array<i64: 1, 24, 1>}, {pipeline_mode = #tpu.pipeline_mode<synchronous>, transform_indices = @transform_4, window_bounds = array<i64: 64, 5>}, {pipeline_mode = #tpu.pipeline_mode<synchronous>, transform_indices = @transform_5, window_bounds = array<i64: 8, 64>}, {transform_indices = @transform_6, window_bounds = array<i64: 1, 8, 16>}]} {
    %c0 = arith.constant 0 : index
    %c0_0 = arith.constant 0 : index
    %c0_1 = arith.constant 0 : index
    %0 = vector.load %arg1[%c0, %c0_0, %c0_1] : memref<1x5x24xf32, #tpu.memory_space<vmem>>, vector<1x5x24xf32>
    %1 = vector.shape_cast %0 : vector<1x5x24xf32> to vector<5x24xf32>
    %c0_2 = arith.constant 0 : index
    %c0_3 = arith.constant 0 : index
    %c0_4 = arith.constant 0 : index
    %2 = vector.load %arg2[%c0_2, %c0_3, %c0_4] : memref<1x64x16xf32, #tpu.memory_space<vmem>>, vector<1x64x16xf32>
    %3 = vector.shape_cast %2 : vector<1x64x16xf32> to vector<64x16xf32>
    %c0_5 = arith.constant 0 : index
    %c0_6 = arith.constant 0 : index
    %c0_7 = arith.constant 0 : index
    %4 = vector.load %arg3[%c0_5, %c0_6, %c0_7] : memref<1x1x24xi32, #tpu.memory_space<vmem>>, vector<1x1x24xi32>
    %5 = vector.shape_cast %4 : vector<1x1x24xi32> to vector<1x24xi32>
    %c0_8 = arith.constant 0 : index
    %c0_9 = arith.constant 0 : index
    %c0_10 = arith.constant 0 : index
    %6 = vector.load %arg4[%c0_8, %c0_9, %c0_10] : memref<1x24x1xi32, #tpu.memory_space<vmem>>, vector<1x24x1xi32>
    %7 = vector.shape_cast %6 : vector<1x24x1xi32> to vector<24x1xi32>
    %c0_11 = arith.constant 0 : index
    %c0_12 = arith.constant 0 : index
    %8 = vector.load %arg5[%c0_11, %c0_12] : memref<64x5xf32, #tpu.memory_space<vmem>>, vector<64x5xf32>
    %c0_13 = arith.constant 0 : index
    %c0_14 = arith.constant 0 : index
    %9 = vector.load %arg6[%c0_13, %c0_14] : memref<8x64xf32, #tpu.memory_space<vmem>>, vector<8x64xf32>
    %cst = arith.constant dense<0.000000e+00> : vector<64x24xf32>
    %10 = tpu.matmul %8, %1, %cst {dimension_numbers = #tpu.dot_dimension_numbers<[1], [0], [0], [1], [0, 0, 1, 1], [], []>} : vector<64x5xf32>, vector<5x24xf32>, vector<64x24xf32> -> vector<64x24xf32>
    %11 = tpu.iota {dimensions = array<i32: 0>} : vector<16x24xi32>
    %12 = vector.broadcast %5 : vector<1x24xi32> to vector<16x24xi32>
    %13 = arith.cmpi eq, %11, %12 : vector<16x24xi32>
    %14 = arith.extui %13 : vector<16x24xi1> to vector<16x24xi32>
    %15 = arith.sitofp %14 : vector<16x24xi32> to vector<16x24xf32>
    %cst_15 = arith.constant dense<0.000000e+00> : vector<64x24xf32>
    %16 = tpu.matmul %3, %15, %cst_15 {dimension_numbers = #tpu.dot_dimension_numbers<[1], [0], [0], [1], [0, 0, 1, 1], [], []>} : vector<64x16xf32>, vector<16x24xf32>, vector<64x24xf32> -> vector<64x24xf32>
    %17 = arith.mulf %10, %16 : vector<64x24xf32>
    %cst_16 = arith.constant dense<0.000000e+00> : vector<8x24xf32>
    %18 = tpu.matmul %9, %17, %cst_16 {dimension_numbers = #tpu.dot_dimension_numbers<[1], [0], [0], [1], [0, 0, 1, 1], [], []>} : vector<8x64xf32>, vector<64x24xf32>, vector<8x24xf32> -> vector<8x24xf32>
    %19 = tpu.iota {dimensions = array<i32: 1>} : vector<24x16xi32>
    %20 = vector.broadcast %7 : vector<24x1xi32> to vector<24x16xi32>
    %21 = arith.cmpi eq, %19, %20 : vector<24x16xi32>
    %22 = arith.extui %21 : vector<24x16xi1> to vector<24x16xi32>
    %23 = arith.sitofp %22 : vector<24x16xi32> to vector<24x16xf32>
    %cst_17 = arith.constant dense<0.000000e+00> : vector<8x16xf32>
    %24 = tpu.matmul %18, %23, %cst_17 {dimension_numbers = #tpu.dot_dimension_numbers<[1], [0], [0], [1], [0, 0, 1, 1], [], []>} : vector<8x24xf32>, vector<24x16xf32>, vector<8x16xf32> -> vector<8x16xf32>
    %c0_18 = arith.constant 0 : index
    %c0_19 = arith.constant 0 : index
    %c0_20 = arith.constant 0 : index
    %25 = vector.load %arg7[%c0_18, %c0_19, %c0_20] : memref<1x8x16xf32, #tpu.memory_space<vmem>>, vector<1x8x16xf32>
    %26 = vector.shape_cast %25 : vector<1x8x16xf32> to vector<8x16xf32>
    %27 = vector.shape_cast %24 : vector<8x16xf32> to vector<1x8x16xf32>
    tpu.vector_store %arg7[%c0_18, %c0_19, %c0_20], %27 {strides = array<i32>} : memref<1x8x16xf32, #tpu.memory_space<vmem>>, vector<1x8x16xf32>,
    return
  }
  func.func @transform_0(%arg0: i32) -> (i32, i32, i32) {
    %c0_i32 = arith.constant 0 : i32
    %c0_i32_0 = arith.constant 0 : i32
    %c0_i32_1 = arith.constant 0 : i32
    return %arg0, %c0_i32, %c0_i32_0 : i32, i32, i32
  }
  func.func @transform_1(%arg0: i32) -> (i32, i32, i32) {
    %c0_i32 = arith.constant 0 : i32
    %c0_i32_0 = arith.constant 0 : i32
    %c0_i32_1 = arith.constant 0 : i32
    return %arg0, %c0_i32, %c0_i32_0 : i32, i32, i32
  }
  func.func @transform_2(%arg0: i32) -> (i32, i32, i32) {
    %c0_i32 = arith.constant 0 : i32
    %c0_i32_0 = arith.constant 0 : i32
    %c0_i32_1 = arith.constant 0 : i32
    return %arg0, %c0_i32, %c0_i32_0 : i32, i32, i32
  }
  func.func @transform_3(%arg0: i32) -> (i32, i32, i32) {
    %c0_i32 = arith.constant 0 : i32
    %c0_i32_0 = arith.constant 0 : i32
    %c0_i32_1 = arith.constant 0 : i32
    return %arg0, %c0_i32, %c0_i32_0 : i32, i32, i32
  }
  func.func @transform_4(%arg0: i32) -> (i32, i32) {
    %c0_i32 = arith.constant 0 : i32
    %c0_i32_0 = arith.constant 0 : i32
    %c0_i32_1 = arith.constant 0 : i32
    return %c0_i32, %c0_i32_0 : i32, i32
  }
  func.func @transform_5(%arg0: i32) -> (i32, i32) {
    %c0_i32 = arith.constant 0 : i32
    %c0_i32_0 = arith.constant 0 : i32
    %c0_i32_1 = arith.constant 0 : i32
    return %c0_i32, %c0_i32_0 : i32, i32
  }
  func.func @transform_6(%arg0: i32) -> (i32, i32, i32) {
    %c0_i32 = arith.constant 0 : i32
    %c0_i32_0 = arith.constant 0 : i32
    %c0_i32_1 = arith.constant 0 : i32
    return %arg0, %c0_i32, %c0_i32_0 : i32, i32, i32
  }
}

</mosaic_0001>

<bundles_post_ra>
// kernel: tpu_custom_call.1
= control target key start
LH: loop header
LB: loop body
LE: loop exit
PB: predicated region body
PF: predicated region fallthrough
CT: control target
= control target key end

     0   :  { %v180_v1 = vlaneseq  ;;  %vm71_vm0 = vcmask 1044480   ;;  %vm46_vm1 = vcmask 39936   ;;  %vm193_vm2 = vcmask 130048   ;;  %s828_s0 = inlined_call_operand.vmem [shape: f32[1,5,24], index: 0, kind: input, shape index: {}]   ;;  %s829_s1 = inlined_call_operand.vmem [shape: f32[1,64,16], index: 1, kind: input, shape index: {}]   ;;  %s830_s2 = inlined_call_operand.vmem [shape: s32[1,1,24], index: 2, kind: input, shape index: {}]   ;;  %s831_s3 = inlined_call_operand.vmem [shape: s32[1,24,1], index: 3, kind: input, shape index: {}]   ;;  %s832_s4 = inlined_call_operand.vmem [shape: f32[64,5], index: 4, kind: input, shape index: {}]   ;;  %s833_s5 = inlined_call_operand.vmem [shape: f32[8,64], index: 5, kind: input, shape index: {}]   ;;  %s834_s6 = inlined_call_operand.hbm [shape: f32[1,8,16], index: 6, kind: output, shape index: {}]  }
   0x1   :  { %v523_v0 = vld [vmem:[%s830_s2] ss:$0 sm:$0xff]  ;;  %v38_v4 = vld [vmem:[%s832_s4 + $0x8] sm:$0xff]  ;;  %v39_v7 = vld [vmem:[%s832_s4 + $0x10] sm:$0xff] }
   0x2   :  { %v24_v2 = vld [vmem:[%s828_s0] sm:$0x1f]  ;;  %v181_v6 = vshrl.u32 %v180_v1, 7  ;;  %v40_v9 = vld [vmem:[%s832_s4 + $0x18] sm:$0xff] }
   0x3   :  { %v37_v3 = vld [vmem:[%s832_s4] sm:$0xff]  ;;  %576 = vmatprep.subr.msk.mxu0 %vm71_vm0, %v24_v2 }
   0x4   :  { %v25_v5 = vld [vmem:[%s829_s1] sm:$0xff]  ;;  %578 = vmatprep.mubr.msk.f32.mxu0 %vm46_vm1, %v37_v3  ;;  %577 = vmatpush3.msk.msra.mxu0 %vm71_vm0, %v24_v2  ;;  %v182_v8 = vadd.s32 8, %v181_v6  ;;  %vm187_vm3 = vcmp.eq.s32.totalorder %v181_v6, %v523_v0 }
   0x5   :  { %594 = vmatprep.mubr.msk.f32.mxu1 %vm193_vm2, %v25_v5  ;;  %579 = vmatmul.mubr.msk.f32.vlgmr.msra.gmra.mrb[0].mxu0 %vm46_vm1, %v38_v4  ;;  %v41_v10 = vld [vmem:[%s832_s4 + $0x20] sm:$0xff] }
   0x6   :  { %581 = vmatprep.mubr.msk.f32.mxu0 %vm46_vm1, %v39_v7  ;;  %vm188_vm4 = vcmp.eq.s32.totalorder %v182_v8, %v523_v0 }
   0x7   :  { %11 = vsyncpa [#allocation3], 0  ;;  %v686_v11 = vmov 1.0|1.0   ;;  %v26_v12 = vld [vmem:[%s829_s1 + $0x8] sm:$0xff]  ;;  %v27_v14 = vld [vmem:[%s829_s1 + $0x10] sm:$0xff] }
   0x8   :  { %vm634_vm5 = vmpackc.low %vm188_vm4, %vm187_vm3  ;;  %v42_v13 = vld [vmem:[%s832_s4 + $0x28] sm:$0xff]  ;;  %v43_v15 = vld [vmem:[%s832_s4 + $0x30] sm:$0xff]  ;;  %v687_v22 = vmov 0.0|0.0   ;;  %vm688_vm6 = vmmov 0   ;;  %v689_v23 = vmov 0.0   ;;  %v690_v26 = vmov 0  }
   0x9   :  { %635 = vmatprep.subr.msk.bf16.mxu1 %vm634_vm5, %v686_v11  ;;  %582 = vmatmul.mubr.msk.f32.gmra.mrb[2].mxu0 %vm46_vm1, %v40_v9  ;;  %v28_v16 = vld [vmem:[%s829_s1 + $0x18] sm:$0xff]  ;;  %v29_v18 = vld [vmem:[%s829_s1 + $0x20] sm:$0xff]  ;;  %v30_v19 = vld [vmem:[%s829_s1 + $0x28] sm:$0xff]  ;;  %vm331_vm7 = vcmask 523264   ;;  %v406_v57 = vand.u32 127, %v180_v1  ;;  %v691_v61 = vmov 1.0  }
   0xa   :  { %637 = vmatpush3.bf16.msk.msra.mxu1 %vm634_vm5, %v686_v11  ;;  %584 = vmatprep.mubr.msk.f32.mxu0 %vm46_vm1, %v41_v10  ;;  %v44_v17 = vld [vmem:[%s832_s4 + $0x38] sm:$0xff]  ;;  %v31_v20 = vld [vmem:[%s829_s1 + $0x30] sm:$0xff]  ;;  %v34_v24 = vld [vmem:[%s831_s3] sm:$0xff]  ;;  %vm425_vm12 = vcmask 195584  }
   0xb   :  { %v32_v21 = vld [vmem:[%s829_s1 + $0x38] sm:$0xff]  ;;  %638 = vmatprep.subr.bf16.mxu0 %v687_v22  ;;  %650 = vmatprep.subr.bf16.mxu1 %v687_v22  ;;  %v36_v25 = vld [vmem:[%s831_s3 + $0x10] sm:$0xff]  ;;  %v35_v27 = vld [vmem:[%s831_s3 + $0x8] sm:$0xff] }
   0xc   :  { %660 = vset.pattern.permute.xlu0 %v690_v26  ;;  %661 = vset.pattern.permute.xlu1 %v690_v26  ;;  %v45_v56 = vld [vmem:[%s833_s5] sm:$0xff]  ;;  %s692_s5 = smov [#allocation2]  }
   0xd   :  { %595 = vmatmul.mubr.msk.f32.vlgmr.msra.gmra.mrb[0].mxu1 %vm193_vm2, %v26_v12  ;;  %585 = vmatmul.mubr.msk.f32.gmra.mrb[4].mxu0 %vm46_vm1, %v42_v13  ;;  %s506_s10 = sshll.u32 %s692_s5, 4  ;;  %s507_s10 = int_to_ptr.vmem [resolvable:$true] %s506_s10 }
   0xe   :  { %597 = vmatprep.mubr.msk.f32.mxu1 %vm193_vm2, %v27_v14  ;;  %587 = vmatprep.mubr.msk.f32.mxu0 %vm46_vm1, %v43_v15  ;;  %s662_s11 = scalar_lea.vmem %s507_s10, 128  ;;  %p667_p1 = scmp.lt.s32.totalorder %s507_s10, %s507_s10 }
   0xf   :  { %408 = vperm.xlu0 %660, %v34_v24   ;;  %414 = vperm.xlu1 %661, %v36_v25   ;;  %p663_p0 = scmp.ne.s32.totalorder %s507_s10, %s662_s11  ;;  %p668_p2 = scmp.lt.s32.totalorder %s662_s11, %s662_s11 }
  0x11   :  { %598 = vmatmul.mubr.msk.f32.gmra.mrb[2].mxu1 %vm193_vm2, %v28_v16  ;;  %588 = vmatmul.mubr.msk.f32.gmra.mrb[6].mxu0 %vm46_vm1, %v44_v17  ;;  %p669_p3 = por %p668_p2, %p667_p1 }
  0x12   :  { %600 = vmatprep.mubr.msk.f32.mxu1 %vm193_vm2, %v29_v18  ;;  %622 = vmatprep.mubr.msk.f32.mxu0 %vm688_vm6, %v689_v23 }
  0x13   :  { %411 = vperm.xlu0 %660, %v35_v27   ;;  %p670_p4 = pnand %p669_p3, %p663_p0 }
  0x15   :  { %601 = vmatmul.mubr.msk.f32.gmra.mrb[4].mxu1 %vm193_vm2, %v30_v19 }
  0x16   :  { %603 = vmatprep.mubr.msk.f32.mxu1 %vm193_vm2, %v31_v20 }
  0x19   :  { %604 = vmatmul.mubr.msk.f32.gmra.mrb[6].mxu1 %vm193_vm2, %v32_v21 }
  0x1a   :  { %631 = vmatprep.mubr.msk.f32.mxu1 %vm688_vm6, %v689_v23 }
  0x8e   :  { %v409_v58 = vpop.permute.xlu0 %408  ;;  %v415_v60 = vpop.permute.xlu1 %414 }
  0x8f   :  { %vm416_vm8 = vcmp.eq.s32.totalorder %v406_v57, %v409_v58  ;;  %vm418_vm11 = vcmp.eq.s32.totalorder %v406_v57, %v415_v60 }
  0x92   :  { %v412_v59 = vpop.permute.xlu0 %411 }
  0x93   :  { %vm417_vm9 = vcmp.eq.s32.totalorder %v406_v57, %v412_v59 }
  0x94   :  { %vm651_vm10 = vmpackc.low %vm417_vm9, %vm416_vm8 }
  0x95   :  { %652 = vmatpush3.bf16.msk.msra.mxu1 %vm651_vm10, %v686_v11 }
  0x96   :  { %629 = vmatprep.subr.mxu1 %v689_v23 }
  0x99   :  { %630 = vmatpush3.msk.msra.mxu1 %vm418_vm11, %v691_v61 }
  0xd8   :  { %v580_v28 = vpop.f32.mrb[0].mxu0 }
  0xd9   :  { %v141_v29 = vpop.f32.mrb[1].mxu0 }
  0xdc   :  { %v583_v30 = vpop.f32.mrb[2].mxu0 }
  0xdd   :  { %v151_v31 = vpop.f32.mrb[3].mxu0 }
  0xe0   :  { %v596_v32 = vpop.f32.mrb[0].mxu1  ;;  %v586_v33 = vpop.f32.mrb[4].mxu0 }
  0xe1   :  { %v324_v34 = vmul.f32 %v596_v32, %v580_v28  ;;  %v284_v35 = vpop.f32.mrb[1].mxu1  ;;  %v161_v36 = vpop.f32.mrb[5].mxu0 }
  0xe2   :  { %v323_v37 = vmul.f32 %v284_v35, %v141_v29 }
  0xe4   :  { %v639_v38 = vpack.c.bf16 %v324_v34, %v323_v37  ;;  %v599_v39 = vpop.f32.mrb[2].mxu1  ;;  %v589_v40 = vpop.f32.mrb[6].mxu0 }
  0xe5   :  { %v326_v41 = vmul.f32 %v599_v39, %v583_v30  ;;  %v294_v42 = vpop.f32.mrb[3].mxu1  ;;  %v171_v43 = vpop.f32.mrb[7].mxu0 }
  0xe6   :  { %v325_v44 = vmul.f32 %v294_v42, %v151_v31  ;;  %640 = vmatpush3.bf16.msra.mxu0 %v639_v38 }
  0xe7   :  { %641 = vmatprep.subr.bf16.mxu0 %v687_v22 }
  0xe8   :  { %v642_v45 = vpack.c.bf16 %v326_v41, %v325_v44  ;;  %v602_v46 = vpop.f32.mrb[4].mxu1 }
  0xe9   :  { %v328_v47 = vmul.f32 %v602_v46, %v586_v33  ;;  %v304_v48 = vpop.f32.mrb[5].mxu1 }
  0xea   :  { %v327_v49 = vmul.f32 %v304_v48, %v161_v36  ;;  %643 = vmatpush3.bf16.msra.mxu0 %v642_v45 }
  0xeb   :  { %644 = vmatprep.subr.bf16.mxu0 %v687_v22 }
  0xec   :  { %v645_v50 = vpack.c.bf16 %v328_v47, %v327_v49  ;;  %v605_v51 = vpop.f32.mrb[6].mxu1 }
  0xed   :  { %v330_v52 = vmul.f32 %v605_v51, %v589_v40  ;;  %v314_v53 = vpop.f32.mrb[7].mxu1 }
  0xee   :  { %v329_v54 = vmul.f32 %v314_v53, %v171_v43  ;;  %646 = vmatpush3.bf16.msra.mxu0 %v645_v50 }
  0xef   :  { %647 = vmatprep.subr.bf16.mxu0 %v687_v22 }
  0xf0   :  { %v648_v55 = vpack.c.bf16 %v330_v52, %v329_v54 }
  0xf2   :  { %649 = vmatpush3.bf16.msra.mxu0 %v648_v55 }
  0xf5   :  { %623 = vmatmul.mubr.msk.f32.vlgmr.msra.gmra.mrb[8].mxu0 %vm331_vm7, %v45_v56 }
 0x1c8   :  { %v401_v62 = vpop.f32.mrb[8].mxu0 }
 0x1c9   :  { %v624_v63 = vpop.f32.mrb[9].mxu0  ;;  %632 = vmatmul.mubr.msk.f32.vlgmr.msra.gmra.mrb[8].mxu1 %vm425_vm12, %v401_v62 }
 0x29c   :  { %v495_v0 = vpop.f32.mrb[8].mxu1 }
 0x29d   :  { %499 = vst.msk [vmem:[#allocation2] sm:$0xff] %vm193_vm2, %v495_v0  ;;  %v633_v1 = vpop.f32.mrb[9].mxu1 }
 0x29e   :  { %673 = shalt.err (!%p670_p4)
}
 0x29f   :  { %s674_s14 = scalar_lea.hbm %s834_s6, 128 }
 0x2a0   :  { %p675_p5 = scmp.ne.s32.totalorder %s834_s6, %s674_s14  ;;  %p678_p6 = scmp.lt.u32.totalorder %s674_s14, %s834_s6 }
 0x2a2   :  { %p680_p7 = pnand %p678_p6, %p675_p5 }
 0x2a4   :  { %683 = shalt.err (!%p680_p7)
}
 0x2a5   :  { %509 = dma.vmem_to_hbm [thread:$0]  %s507_s10, 128, %s834_s6, [#allocation3]  }
 0x2a6   :  { %684 = dma.done.wait [#allocation3], 128  }
 0x2a7   :  { %685 = vsyncadd [#allocation3], 4294967168 }
 0x2a8   :  { %513 = vsyncpa [#allocation3], 1 }

</bundles_post_ra>
